<compile_context>
chip_gen: v5e
topology: v5e:2x2
jax: 0.10.0
libtpu: 0.0.40
codegen_flags: <defaults>
</compile_context>

<pallas_src>
import math

import jax
import jax.numpy as jnp
from jax.experimental import pallas as pl
from jax.experimental.pallas import tpu as pltpu


def _round_up(x, m):
    return (x + m - 1) // m * m


# --------------------------------------------------------------------------
# Kernel: one row-tile of positions -> (bn, 2, half_dim) sin/cos embedding.
# --------------------------------------------------------------------------
def _sinusoidal_kernel(x_ref, f_ref, o_ref):
    pos = x_ref[...].astype(jnp.float32)          # (bn, 1)
    freqs = f_ref[...]                            # (1, half_dim), resident
    args = pos * freqs                            # (bn, half_dim) broadcast
    o_ref[:, 0, :] = jnp.sin(args).astype(o_ref.dtype)   # direct lane-dense store
    o_ref[:, 1, :] = jnp.cos(args).astype(o_ref.dtype)   # direct lane-dense store


def sinusoidal_pos_emb(x, dim, *, row_tile=512, out_dtype=jnp.float32):
    """x: (N,) positions (int or float). Returns (N, dim) sinusoidal embedding."""
    assert dim % 2 == 0 and dim >= 4, dim          # dim==2 would divide by zero
    half_dim = dim // 2
    neg_log_scale = -(math.log(10000.0) / (half_dim - 1))

    n = x.shape[0]
    n_pad = _round_up(n, 8)                        # minimal sublane padding

    # Row tile: multiple of 8, divides n_pad (so no post-kernel copy when the
    # input is already aligned), and <= n_pad/2 when possible so the grid has
    # >= 2 steps for two-TensorCore sharding on v7x.
    bn = min(row_tile, n_pad)
    if n_pad >= 16:
        bn = min(bn, _round_up(pl.cdiv(n_pad, 2), 8))
    bn = max(bn, 8)
    while n_pad % bn != 0:
        bn -= 8

    # Frequency table built once on the host-side JAX graph (not per grid step).
    freqs = jnp.exp(
        jnp.arange(half_dim, dtype=jnp.float32) * neg_log_scale
    ).reshape(1, half_dim)

    x_f = x.astype(jnp.float32)                    # NOTE: ints > 2^24 lose precision,
    if n_pad != n:                                 # same as the fp32 PyTorch reference.
        x_f = jnp.pad(x_f, (0, n_pad - n))
    x2 = x_f.reshape(n_pad, 1)

    out = pl.pallas_call(
        _sinusoidal_kernel,
        grid=(n_pad // bn,),
        in_specs=[
            pl.BlockSpec((bn, 1), lambda i: (i, 0)),
            pl.BlockSpec((1, half_dim), lambda i: (0, 0)),   # constant block -> resident
        ],
        out_specs=pl.BlockSpec((bn, 2, half_dim), lambda i: (i, 0, 0)),
        out_shape=jax.ShapeDtypeStruct((n_pad, 2, half_dim), out_dtype),
        compiler_params=pltpu.CompilerParams(
            dimension_semantics=("parallel",)),
    )(x2, freqs)

    out = out.reshape(n_pad, dim)                  # contiguous -> equivalent to concat
    if n_pad != n:
        out = out[:n]
    return out


# --------------------------------------------------------------------------
# Pure-JAX reference (mirrors the PyTorch module exactly).
# --------------------------------------------------------------------------
def sinusoidal_pos_emb_ref(x, dim):
    half_dim = dim // 2
    emb = math.log(10000.0) / (half_dim - 1)
    emb = jnp.exp(jnp.arange(half_dim, dtype=jnp.float32) * -emb)
    emb = x.astype(jnp.float32)[:, None] * emb[None, :]
    return jnp.concatenate([jnp.sin(emb), jnp.cos(emb)], axis=-1)


# --------------------------------------------------------------------------
if __name__ == "__main__":
    import functools

    key = jax.random.PRNGKey(0)
    N, DIM = 8, 32                                 # small demo shapes

    # diffusion-style timesteps: deterministic, moderate magnitude
    x = jax.random.uniform(key, (N,), jnp.float32, minval=0.0, maxval=1000.0)

    fwd = jax.jit(functools.partial(sinusoidal_pos_emb, dim=DIM))
    y = jax.block_until_ready(fwd(x))

    y_ref = sinusoidal_pos_emb_ref(x, DIM)

    assert y.shape == (N, DIM), y.shape
    assert bool(jnp.isfinite(y).all())
    assert bool(jnp.allclose(y, y_ref, atol=1e-5, rtol=1e-5)), (
        float(jnp.max(jnp.abs(y - y_ref))))
    print("KERNEL_OK")
</pallas_src>

<mosaic_0001>
module attributes {stable_mosaic.version = 11 : i64} {
  func.func @_sinusoidal_kernel(%arg0: i32, %arg1: memref<8x1xf32, #tpu.memory_space<vmem>>, %arg2: memref<1x16xf32, #tpu.memory_space<vmem>>, %arg3: memref<8x2x16xf32, #tpu.memory_space<vmem>>) attributes {dimension_semantics = [#tpu.dimension_semantics<parallel>], iteration_bounds = array<i64: 1>, scalar_prefetch = 0 : i64, scratch_operands = 0 : i64, tpu.core_type = #tpu.core_type<tc>, window_params = [{transform_indices = @transform_0, window_bounds = array<i64: 8, 1>}, {pipeline_mode = #tpu.pipeline_mode<synchronous>, transform_indices = @transform_1, window_bounds = array<i64: 1, 16>}, {transform_indices = @transform_2, window_bounds = array<i64: 8, 2, 16>}]} {
    %c0 = arith.constant 0 : index
    %c0_0 = arith.constant 0 : index
    %0 = vector.load %arg1[%c0, %c0_0] : memref<8x1xf32, #tpu.memory_space<vmem>>, vector<8x1xf32>
    %c0_1 = arith.constant 0 : index
    %c0_2 = arith.constant 0 : index
    %1 = vector.load %arg2[%c0_1, %c0_2] : memref<1x16xf32, #tpu.memory_space<vmem>>, vector<1x16xf32>
    %2 = vector.broadcast %0 : vector<8x1xf32> to vector<8x16xf32>
    %3 = vector.broadcast %1 : vector<1x16xf32> to vector<8x16xf32>
    %4 = arith.mulf %2, %3 : vector<8x16xf32>
    %5 = math.sin %4 : vector<8x16xf32>
    %c0_3 = arith.constant 0 : index
    %c0_4 = arith.constant 0 : index
    %c0_5 = arith.constant 0 : index
    %6 = vector.load %arg3[%c0_3, %c0_4, %c0_5] : memref<8x2x16xf32, #tpu.memory_space<vmem>>, vector<8x1x16xf32>
    %7 = vector.shape_cast %6 : vector<8x1x16xf32> to vector<8x16xf32>
    %8 = vector.shape_cast %5 : vector<8x16xf32> to vector<8x1x16xf32>
    tpu.vector_store %arg3[%c0_3, %c0_4, %c0_5], %8 {strides = array<i32>} : memref<8x2x16xf32, #tpu.memory_space<vmem>>, vector<8x1x16xf32>,
    %9 = math.cos %4 : vector<8x16xf32>
    %c0_6 = arith.constant 0 : index
    %c1 = arith.constant 1 : index
    %c0_7 = arith.constant 0 : index
    %10 = vector.load %arg3[%c0_6, %c1, %c0_7] : memref<8x2x16xf32, #tpu.memory_space<vmem>>, vector<8x1x16xf32>
    %11 = vector.shape_cast %10 : vector<8x1x16xf32> to vector<8x16xf32>
    %12 = vector.shape_cast %9 : vector<8x16xf32> to vector<8x1x16xf32>
    tpu.vector_store %arg3[%c0_6, %c1, %c0_7], %12 {strides = array<i32>} : memref<8x2x16xf32, #tpu.memory_space<vmem>>, vector<8x1x16xf32>,
    return
  }
  func.func @transform_0(%arg0: i32) -> (i32, i32) {
    %c0_i32 = arith.constant 0 : i32
    %c0_i32_0 = arith.constant 0 : i32
    return %arg0, %c0_i32 : i32, i32
  }
  func.func @transform_1(%arg0: i32) -> (i32, i32) {
    %c0_i32 = arith.constant 0 : i32
    %c0_i32_0 = arith.constant 0 : i32
    %c0_i32_1 = arith.constant 0 : i32
    return %c0_i32, %c0_i32_0 : i32, i32
  }
  func.func @transform_2(%arg0: i32) -> (i32, i32, i32) {
    %c0_i32 = arith.constant 0 : i32
    %c0_i32_0 = arith.constant 0 : i32
    %c0_i32_1 = arith.constant 0 : i32
    return %arg0, %c0_i32, %c0_i32_0 : i32, i32, i32
  }
}

</mosaic_0001>

<bundles_post_ra>
// kernel: sinusoidal_pos_emb.1
= control target key start
LH: loop header
LB: loop body
LE: loop exit
PB: predicated region body
PF: predicated region fallthrough
CT: control target
= control target key end

     0   :  { %v397_v0 = vmov 0   ;;  %v398_v16 = vmov 683565275   ;;  %v399_v18 = vmov 2475754826   ;;  %s550_s0 = inlined_call_operand.vmem [shape: f32[8,1], index: 0, kind: input, shape index: {}]   ;;  %s551_s1 = inlined_call_operand.vmem [shape: f32[1,16], index: 1, kind: input, shape index: {}]   ;;  %s552_s2 = inlined_call_operand.vmem [shape: f32[8,2,16], index: 2, kind: output, shape index: {}]  }
   0x1   :  { %395 = vset.pattern.permute.xlu0 %v397_v0  ;;  %v11_v1 = vld [vmem:[%s550_s0] sm:$0xff]  ;;  %v400_v21 = vmov 2131351028   ;;  %v401_v24 = vmov 2102212464  }
   0x2   :  { %15 = vperm.xlu0 %395, %v11_v1   ;;  %v396_v2 = vld [vmem:[%s551_s1] ss:$0 sm:$0xff]  ;;  %v402_v27 = vmov 920167782   ;;  %v403_v30 = vmov 1326507024  }
  0x74   :  { %v16_v3 = vpop.permute.xlu0 %15 }
  0x75   :  { %v426_v4 = vmul.f32 %v396_v2, %v16_v3 }
  0x77   :  { %v25_v5 = vand.u32 2139095040, %v426_v4  ;;  %v22_v8 = vand.u32 2147483647, %v426_v4  ;;  %vm24_vm12 = vcmp.lt.s32.totalorder %v426_v4, 0 }
  0x79   :  { %v26_v6 = vshrl.u32 %v25_v5, 23  ;;  %v29_v10 = vand.u32 8388607, %v22_v8  ;;  %vm23_vm13 = vcmp.le.f32.partialorder %v22_v8, 0.7853982 }
  0x7b   :  { %v382_v7 = vadd.s32 4294967169, %v26_v6  ;;  %v30_v14 = vor.u32 8388608, %v29_v10 }
  0x7d   :  { %v32_v9 = vadd.s32 1, %v382_v7  ;;  %v443_v37 = vshll.u32 %v30_v14, 8 }
  0x7f   :  { %vm33_vm0 = vcmp.gt.s32.totalorder %v32_v9, 0  ;;  %v71_v46 = vand.u32 65535, %v443_v37  ;;  %v72_v47 = vshrl.u32 %v443_v37, 16 }
  0x80   :  { %v34_v11 = vsel %vm33_vm0, %v32_v9, 0 }
  0x81   :  { %v36_v12 = vand.u32 31, %v34_v11  ;;  %v434_v15 = vshrl.u32 %v34_v11, 5 }
  0x83   :  { %v432_v13 = vsub.s32 32, %v36_v12  ;;  %v39_v17 = vshll.u32 %v398_v16, %v36_v12  ;;  %v42_v19 = vshll.u32 %v399_v18, %v36_v12  ;;  %v45_v23 = vshll.u32 %v400_v21, %v36_v12 }
  0x84   :  { %v48_v26 = vshll.u32 %v401_v24, %v36_v12  ;;  %v51_v29 = vshll.u32 %v402_v27, %v36_v12  ;;  %vm54_vm1 = vcmp.lt.s32.totalorder %v434_v15, 1  ;;  %vm57_vm2 = vcmp.lt.s32.totalorder %v434_v15, 4 }
  0x85   :  { %v40_v20 = vshrl.u32 %v399_v18, %v432_v13  ;;  %v43_v22 = vshrl.u32 %v400_v21, %v432_v13  ;;  %v46_v25 = vshrl.u32 %v401_v24, %v432_v13  ;;  %v49_v28 = vshrl.u32 %v402_v27, %v432_v13 }
  0x86   :  { %v52_v31 = vshrl.u32 %v403_v30, %v432_v13  ;;  %vm56_vm3 = vcmp.lt.s32.totalorder %v434_v15, 3  ;;  %vm55_vm4 = vcmp.lt.s32.totalorder %v434_v15, 2  ;;  %v38_v11 = vshrl.u32 %v398_v16, %v432_v13 }
  0x87   :  { %v41_v32 = vor.u32 %v40_v20, %v39_v17  ;;  %v44_v33 = vor.u32 %v43_v22, %v42_v19  ;;  %v47_v34 = vor.u32 %v46_v25, %v45_v23  ;;  %v50_v35 = vor.u32 %v49_v28, %v48_v26 }
  0x88   :  { %v53_v36 = vor.u32 %v52_v31, %v51_v29 }
  0x89   :  { %v62_v38 = vsel %vm54_vm1, %v41_v32, %v44_v33  ;;  %v66_v39 = vsel %vm54_vm1, %v44_v33, %v47_v34  ;;  %v63_v40 = vsel %vm57_vm2, %v50_v35, 920167782  ;;  %v59_v7 = vsel %vm57_vm2, %v47_v34, 2102212464 }
  0x8a   :  { %v67_v41 = vsel %vm57_vm2, %v53_v36, 1326507024  ;;  %v64_v42 = vsel %vm56_vm3, %v47_v34, %v63_v40  ;;  %v58_v20 = vsel %vm54_vm1, %v38_v11, %v41_v32  ;;  %v60_v21 = vsel %vm56_vm3, %v44_v33, %v59_v7 }
  0x8b   :  { %v68_v43 = vsel %vm56_vm3, %v50_v35, %v67_v41  ;;  %v65_v44 = vsel %vm55_vm4, %v62_v38, %v64_v42  ;;  %v61_v13 = vsel %vm55_vm4, %v58_v20, %v60_v21 }
  0x8c   :  { %v69_v45 = vsel %vm55_vm4, %v66_v39, %v68_v43  ;;  %v95_v50 = vand.u32 65535, %v65_v44  ;;  %v96_v51 = vshrl.u32 %v65_v44, 16  ;;  %v115_v28 = vmul.u32 %v443_v37, %v61_v13 }
  0x8d   :  { %v73_v48 = vand.u32 65535, %v69_v45  ;;  %v74_v49 = vshrl.u32 %v69_v45, 16  ;;  %vm192_vm4 = vcmask 122880  }
  0x8e   :  { %v98_v54 = vmul.u32 %v96_v51, %v71_v46  ;;  %v99_v55 = vmul.u32 %v95_v50, %v72_v47  ;;  %v97_v59 = vmul.u32 %v95_v50, %v71_v46  ;;  %v100_v63 = vmul.u32 %v96_v51, %v72_v47 }
  0x8f   :  { %v76_v52 = vmul.u32 %v74_v49, %v71_v46  ;;  %v77_v53 = vmul.u32 %v73_v48, %v72_v47  ;;  %v75_v56 = vmul.u32 %v73_v48, %v71_v46  ;;  %v78_v58 = vmul.u32 %v74_v49, %v72_v47 }
  0x90   :  { %v101_v60 = vshll.u32 %v98_v54, 16  ;;  %v103_v2 = vshll.u32 %v99_v55, 16  ;;  %v102_v18 = vshrl.u32 %v98_v54, 16  ;;  %v104_v24 = vshrl.u32 %v99_v55, 16 }
  0x91   :  { %v79_v57 = vshll.u32 %v76_v52, 16  ;;  %v81_v61 = vshll.u32 %v77_v53, 16  ;;  %v80_v12 = vshrl.u32 %v76_v52, 16  ;;  %v82_v22 = vshrl.u32 %v77_v53, 16 }
  0x92   :  { %vm105_vm6 = vc.u32 %v97_v59, %v101_v60  ;;  %v107_v3 = vadd.s32 %v101_v60, %v97_v59 }
  0x93   :  { %vm83_vm5 = vc.u32 %v75_v56, %v79_v57  ;;  %v85_v62 = vadd.s32 %v79_v57, %v75_v56  ;;  %v106_v6 = vsel %vm105_vm6, 1, %v397_v0 }
  0x94   :  { %v84_v1 = vsel %vm83_vm5, 1, %v397_v0  ;;  %v108_v10 = vadd.s32 %v106_v6, %v100_v63  ;;  %vm109_vm8 = vc.u32 %v107_v3, %v103_v2  ;;  %v111_v27 = vadd.s32 %v107_v3, %v103_v2 }
  0x95   :  { %v86_v5 = vadd.s32 %v84_v1, %v78_v58  ;;  %vm87_vm7 = vc.u32 %v85_v62, %v81_v61  ;;  %v110_v17 = vsel %vm109_vm8, 1, %v397_v0  ;;  %vm165_vm5 = vweird.f32 %v426_v4 }
  0x96   :  { %v88_v9 = vsel %vm87_vm7, 1, %v397_v0  ;;  %v112_v19 = vadd.s32 %v110_v17, %v108_v10 }
  0x97   :  { %v90_v14 = vadd.s32 %v88_v9, %v86_v5 }
  0x98   :  { %v113_v25 = vadd.s32 %v112_v19, %v102_v18 }
  0x99   :  { %v91_v23 = vadd.s32 %v90_v14, %v80_v12 }
  0x9a   :  { %v114_v16 = vadd.s32 %v113_v25, %v104_v24 }
  0x9b   :  { %v92_v26 = vadd.s32 %v91_v23, %v82_v22 }
  0x9c   :  { %v118_v0 = vadd.s32 1, %v114_v16 }
  0x9d   :  { %vm117_vm9 = vc.u32 %v92_v26, %v111_v27  ;;  %v116_v15 = vadd.s32 %v111_v27, %v92_v26 }
  0x9e   :  { %v119_v29 = vsel %vm117_vm9, %v118_v0, %v114_v16 }
  0x9f   :  { %v120_v30 = vadd.s32 %v119_v29, %v115_v28 }
  0xa1   :  { %v121_v31 = vadd.s32 536870912, %v120_v30 }
  0xa3   :  { %v122_v32 = vshrl.u32 %v121_v31, 30 }
  0xa5   :  { %v123_v34 = vshll.u32 %v122_v32, 30  ;;  %v146_v53 = vsub.s32 4, %v122_v32 }
  0xa7   :  { %v124_v33 = vsub.s32 %v120_v30, %v123_v34  ;;  %v147_v58 = vsel %vm24_vm12, %v146_v53, %v122_v32 }
  0xa8   :  { %v149_v61 = vsel %vm23_vm13, 0, %v147_v58 }
  0xa9   :  { %vm125_vm10 = vcmp.lt.s32.totalorder %v124_v33, 0  ;;  %v126_v35 = vsub.s32 0, %v124_v33  ;;  %v166_v3 = vadd.s32 3, %v149_v61  ;;  %v345_v9 = vand.u32 3, %v149_v61 }
  0xab   :  { %v127_v36 = vsel %vm125_vm10, %v126_v35, %v124_v33  ;;  %v167_v10 = vand.u32 3, %v166_v3  ;;  %vm346_vm14 = vcmp.lt.s32.totalorder %v345_v9, 2  ;;  %vm347_vm15 = vcmp.eq.s32.totalorder %v345_v9, 0 }
  0xac   :  { %v128_v38 = vclz %v127_v36  ;;  %vm350_vm0 = vcmp.eq.s32.totalorder %v345_v9, 2 }
  0xad   :  { %vm168_vm1 = vcmp.lt.s32.totalorder %v167_v10, 2  ;;  %vm169_vm2 = vcmp.eq.s32.totalorder %v167_v10, 0  ;;  %vm172_vm3 = vcmp.eq.s32.totalorder %v167_v10, 2 }
  0xae   :  { %v383_v39 = vadd.s32 4294967294, %v128_v38 }
  0xb0   :  { %vm384_vm11 = vcmp.lt.s32.totalorder %v383_v39, 0 }
  0xb1   :  { %v131_v40 = vsel %vm384_vm11, 0, %v383_v39 }
  0xb2   :  { %v132_v41 = vsub.s32 32, %v131_v40  ;;  %v136_v42 = vsub.s32 4294967266, %v131_v40  ;;  %v133_v43 = vshll.u32 %v124_v33, %v131_v40 }
  0xb4   :  { %v134_v44 = vshrl.u32 %v116_v15, %v132_v41  ;;  %v137_v45 = vadd.s32 127, %v136_v42 }
  0xb6   :  { %v135_v37 = vor.u32 %v134_v44, %v133_v43  ;;  %v138_v46 = vshll.u32 %v137_v45, 23 }
  0xb8   :  { %v139_v47 = vor.u32 4788187, %v138_v46  ;;  %v142_v49 = vcvt.s32.f32 %v135_v37 }
  0xba   :  { %v140_v48 = vand.u32 2147483647, %v139_v47 }
  0xbc   :  { %v143_v50 = vmul.f32 %v142_v49, %v140_v48 }
  0xbe   :  { %v144_v51 = vxor.u32 2147483648, %v143_v50 }
  0xc0   :  { %v145_v52 = vsel %vm24_vm12, %v144_v51, %v143_v50 }
  0xc1   :  { %v148_v54 = vsel %vm23_vm13, %v426_v4, %v145_v52 }
  0xc2   :  { %v150_v55 = vmul.f32 %v148_v54, %v148_v54 }
  0xc4   :  { %v151_v56 = vmul.f32 -0.001358992, %v150_v55  ;;  %v158_v57 = vmul.f32 -0.00019511016, %v150_v55 }
  0xc6   :  { %v152_v59 = vadd.f32 0.041655596, %v151_v56  ;;  %v159_v60 = vadd.f32 0.008332121, %v158_v57 }
  0xc8   :  { %v153_v62 = vmul.f32 %v152_v59, %v150_v55  ;;  %v160_v63 = vmul.f32 %v159_v60, %v150_v55 }
  0xca   :  { %v154_v1 = vadd.f32 -0.4999988, %v153_v62  ;;  %v161_v2 = vadd.f32 -0.16666654, %v160_v63 }
  0xcc   :  { %v155_v5 = vmul.f32 %v154_v1, %v150_v55  ;;  %v162_v6 = vmul.f32 %v161_v2, %v150_v55 }
  0xce   :  { %v156_v7 = vadd.f32 1.0, %v155_v5  ;;  %v163_v8 = vadd.f32 1.0, %v162_v6 }
  0xd0   :  { %v164_v11 = vmul.f32 %v163_v8, %v148_v54  ;;  %v173_v12 = vxor.u32 2147483648, %v156_v7 }
  0xd2   :  { %v170_v14 = vxor.u32 2147483648, %v164_v11  ;;  %v174_v18 = vsel %vm172_vm3, %v173_v12, %v164_v11  ;;  %v352_v20 = vsel %vm350_vm0, %v173_v12, %v164_v11 }
  0xd4   :  { %v171_v17 = vsel %vm169_vm2, %v156_v7, %v170_v14  ;;  %v349_v19 = vsel %vm347_vm15, %v156_v7, %v170_v14 }
  0xd5   :  { %v175_v21 = vsel %vm168_vm1, %v171_v17, %v174_v18  ;;  %v353_v22 = vsel %vm346_vm14, %v349_v19, %v352_v20 }
  0xd6   :  { %v176_v23 = vsel %vm165_vm5, nan, %v175_v21  ;;  %v354_v24 = vsel %vm165_vm5, nan, %v353_v22 }
  0xd7   :  { %v178_v25 = vrot.slane %v176_v23, 1  ;;  %v179_v26 = vrot.slane %v176_v23, 2  ;;  %v180_v27 = vrot.slane %v176_v23, 3  ;;  %193 = vst.msk [vmem:[%s552_s2] sm:$0x1] %vm192_vm4, %v176_v23  ;;  %v181_v13 = vrot.slane %v176_v23, 4 }
  0xd8   :  { %370 = vst.msk [vmem:[%s552_s2 + $0x1] sm:$0x1] %vm192_vm4, %v354_v24  ;;  %v182_v16 = vrot.slane %v176_v23, 5  ;;  %v183_v4 = vrot.slane %v176_v23, 6  ;;  %v184_v0 = vrot.slane %v176_v23, 7  ;;  %v356_v28 = vrot.slane %v354_v24, 1 }
  0xd9   :  { %194 = vst.msk [vmem:[%s552_s2 + $0x2] sm:$0x1] %vm192_vm4, %v178_v25  ;;  %v357_v29 = vrot.slane %v354_v24, 2  ;;  %v358_v30 = vrot.slane %v354_v24, 3  ;;  %v359_v31 = vrot.slane %v354_v24, 4  ;;  %v360_v32 = vrot.slane %v354_v24, 5 }
  0xda   :  { %195 = vst.msk [vmem:[%s552_s2 + $0x4] sm:$0x1] %vm192_vm4, %v179_v26  ;;  %v361_v34 = vrot.slane %v354_v24, 6  ;;  %v362_v33 = vrot.slane %v354_v24, 7 }
  0xdb   :  { %196 = vst.msk [vmem:[%s552_s2 + $0x6] sm:$0x1] %vm192_vm4, %v180_v27 }
  0xdc   :  { %197 = vst.msk [vmem:[%s552_s2 + $0x8] sm:$0x1] %vm192_vm4, %v181_v13 }
  0xdd   :  { %198 = vst.msk [vmem:[%s552_s2 + $0xa] sm:$0x1] %vm192_vm4, %v182_v16 }
  0xde   :  { %199 = vst.msk [vmem:[%s552_s2 + $0xc] sm:$0x1] %vm192_vm4, %v183_v4 }
  0xdf   :  { %200 = vst.msk [vmem:[%s552_s2 + $0xe] sm:$0x1] %vm192_vm4, %v184_v0 }
  0xe0   :  { %371 = vst.msk [vmem:[%s552_s2 + $0x3] sm:$0x1] %vm192_vm4, %v356_v28 }
  0xe1   :  { %372 = vst.msk [vmem:[%s552_s2 + $0x5] sm:$0x1] %vm192_vm4, %v357_v29 }
  0xe2   :  { %373 = vst.msk [vmem:[%s552_s2 + $0x7] sm:$0x1] %vm192_vm4, %v358_v30 }
  0xe3   :  { %374 = vst.msk [vmem:[%s552_s2 + $0x9] sm:$0x1] %vm192_vm4, %v359_v31 }
  0xe4   :  { %375 = vst.msk [vmem:[%s552_s2 + $0xb] sm:$0x1] %vm192_vm4, %v360_v32 }
  0xe5   :  { %376 = vst.msk [vmem:[%s552_s2 + $0xd] sm:$0x1] %vm192_vm4, %v361_v34 }
  0xe6   :  { %377 = vst.msk [vmem:[%s552_s2 + $0xf] sm:$0x1] %vm192_vm4, %v362_v33 }

</bundles_post_ra>
